<compile_context>
chip_gen: v5e
topology: v5e:2x2
jax: 0.10.0
libtpu: 0.0.40
codegen_flags: <defaults>
</compile_context>

<pallas_src>
import math

import jax
import jax.numpy as jnp
from jax.experimental import pallas as pl
from jax.experimental.pallas import tpu as pltpu

CHAR_SIZE = 54
EMBED_SIZE = 100


def _round_up(n, m):
    return ((n + m - 1) // m) * m


def _pick_row_tile(M, tm):
    """Row tile: multiple of 8, <= requested tm, and (when possible) small
    enough that the grid has >= 2 blocks so both v7x TensorCores get work."""
    half = _round_up(max(pl.cdiv(M, 2), 8), 8)
    return max(8, min(tm, half))


# ---------------------------------------------------------------------------
# Kernels
# ---------------------------------------------------------------------------

def _embed_matmul_kernel(x_ref, w_ref, o_ref):
    # x_ref: (tm, C) dense rows; w_ref: (C, E) VMEM-resident weight; o_ref: (tm, E)
    o_ref[...] = jnp.dot(
        x_ref[...], w_ref[...], preferred_element_type=jnp.float32
    ).astype(o_ref.dtype)


def _embed_onehot_kernel(ids_ref, w_ref, o_ref):
    # ids_ref: (tm, 1) int32 char ids. Build the one-hot in-register
    # (iota == id) and feed the MXU; only 4 B/row ever crosses HBM on input.
    tm = ids_ref.shape[0]
    c = w_ref.shape[0]
    iota = jax.lax.broadcasted_iota(jnp.int32, (tm, c), 1)
    onehot = (iota == ids_ref[...]).astype(w_ref.dtype)
    o_ref[...] = jnp.dot(
        onehot, w_ref[...], preferred_element_type=jnp.float32
    ).astype(o_ref.dtype)


# ---------------------------------------------------------------------------
# Tiled launcher shared by both paths
# ---------------------------------------------------------------------------

def _run_rows_kernel(kernel, rows, weight, *, tm, out_dtype):
    """rows: (M, K) array blocked along rows; returns (M, E) in out_dtype."""
    M, K = rows.shape
    _, E = weight.shape

    tm_eff = _pick_row_tile(M, tm)
    Mpad = _round_up(M, tm_eff)
    if Mpad != M:
        rows = jnp.pad(rows, ((0, Mpad - M), (0, 0)))
    num_blocks = Mpad // tm_eff

    out = pl.pallas_call(
        kernel,
        out_shape=jax.ShapeDtypeStruct((Mpad, E), out_dtype),
        grid_spec=pltpu.PrefetchScalarGridSpec(
            num_scalar_prefetch=0,
            grid=(num_blocks,),
            in_specs=[
                # Row-blocked input (last dim = full array extent).
                pl.BlockSpec((tm_eff, K), lambda i: (i, 0)),
                # Whole (54, 100) weight resident in VMEM for all grid steps.
                pl.BlockSpec(memory_space=pltpu.MemorySpace.VMEM),
            ],
            # E = 100 is the full array extent -> allowed; kept unpadded
            # (lane-padding to 128 would add HBM write bytes, see header).
            out_specs=pl.BlockSpec((tm_eff, E), lambda i: (i, 0)),
        ),
        compiler_params=pltpu.CompilerParams(
            dimension_semantics=("parallel",),
        ),
    )(rows, weight)

    return out[:M] if Mpad != M else out


# ---------------------------------------------------------------------------
# Public forward passes
# ---------------------------------------------------------------------------

def embedding_forward(x, weight, *, tm=2048, min_pallas_rows=512, out_dtype=None):
    """PyTorch-equivalent forward: (x @ weight).flatten(2).

    x: (B, S, ..., C) float; weight: (C, E) -> (B, S, prod(...) * E).
    """
    *lead, C = x.shape
    Cw, E = weight.shape
    assert C == Cw, "last dim of x must equal char_size"
    assert len(lead) >= 2, "need at least (B, S, ...) leading dims for flatten(2)"
    out_dtype = x.dtype if out_dtype is None else out_dtype

    B, S = lead[0], lead[1]
    M = 1
    for d in lead:
        M *= d

    if M < min_pallas_rows:
        # Tiny problems: fixed pallas_call + per-step overhead dominates.
        out2d = jnp.matmul(x.reshape(M, C), weight).astype(out_dtype)
    else:
        out2d = _run_rows_kernel(
            _embed_matmul_kernel, x.reshape(M, C), weight, tm=tm, out_dtype=out_dtype
        )

    # flatten(2): (B, S, ..., E) -> (B, S, prod(...) * E); layout glue only.
    return out2d.reshape(B, S, (M // (B * S)) * E)


def embedding_forward_from_ids(char_ids, weight, *, tm=2048, min_pallas_rows=512,
                               out_dtype=jnp.float32):
    """Fast path: char_ids int32 of shape (B, S, ...). Equivalent to
    embedding_forward(one_hot(char_ids, char_size), weight)."""
    C, E = weight.shape
    lead = char_ids.shape
    assert len(lead) >= 2, "need at least (B, S, ...) leading dims for flatten(2)"
    B, S = lead[0], lead[1]
    M = 1
    for d in lead:
        M *= d

    if M < min_pallas_rows:
        out2d = jnp.take(weight, char_ids.reshape(M), axis=0).astype(out_dtype)
    else:
        ids2d = char_ids.reshape(M, 1).astype(jnp.int32)
        out2d = _run_rows_kernel(
            _embed_onehot_kernel, ids2d, weight, tm=tm, out_dtype=out_dtype
        )

    return out2d.reshape(B, S, (M // (B * S)) * E)


def init_weight(key):
    # kaiming_uniform_(a=sqrt(5)) on a (54, 100) weight: fan_in = 100,
    # gain = sqrt(2/(1+a^2)), bound = gain * sqrt(3/fan_in)  (matches PyTorch).
    a = math.sqrt(5.0)
    fan_in = EMBED_SIZE
    gain = math.sqrt(2.0 / (1.0 + a * a))
    bound = gain * math.sqrt(3.0 / fan_in)
    return jax.random.uniform(
        key, (CHAR_SIZE, EMBED_SIZE), dtype=jnp.float32,
        minval=-bound, maxval=bound,
    )


if __name__ == "__main__":
    key = jax.random.PRNGKey(0)
    kw, kx = jax.random.split(key)

    weight = init_weight(kw)

    # Small example: batch=2, seq=8, word_len=4 one-hot chars over 54 (M=64).
    B, S, W = 2, 8, 4
    char_ids = jax.random.randint(kx, (B, S, W), 0, CHAR_SIZE)
    x = jax.nn.one_hot(char_ids, CHAR_SIZE, dtype=jnp.float32)  # (2, 8, 4, 54)

    # min_pallas_rows=0 forces the Pallas kernels even at this tiny demo size
    # (real workloads use the default dispatch threshold).
    out_dense = embedding_forward(x, weight, min_pallas_rows=0)
    out_dense = jax.block_until_ready(out_dense)

    out_ids = embedding_forward_from_ids(char_ids, weight, min_pallas_rows=0)
    out_ids = jax.block_until_ready(out_ids)

    # Reference check against plain JAX (PyTorch-equivalent math).
    ref = jnp.matmul(x, weight).reshape(B, S, W * EMBED_SIZE)
    assert out_dense.shape == (B, S, W * EMBED_SIZE)
    assert out_ids.shape == (B, S, W * EMBED_SIZE)
    assert jnp.allclose(out_dense, ref, atol=1e-5, rtol=1e-5)
    assert jnp.allclose(out_ids, ref, atol=1e-5, rtol=1e-5)

    print("KERNEL_OK")
</pallas_src>

<mosaic_0001>
module attributes {stable_mosaic.version = 11 : i64} {
  func.func @_embed_matmul_kernel(%arg0: i32, %arg1: memref<32x54xf32, #tpu.memory_space<vmem>>, %arg2: memref<54x100xf32, #tpu.memory_space<vmem>>, %arg3: memref<32x100xf32, #tpu.memory_space<vmem>>) attributes {dimension_semantics = [#tpu.dimension_semantics<parallel>], iteration_bounds = array<i64: 2>, scalar_prefetch = 0 : i64, scratch_operands = 0 : i64, tpu.core_type = #tpu.core_type<tc>, window_params = [{transform_indices = @transform_0, window_bounds = array<i64: 32, 54>}, {pipeline_mode = #tpu.pipeline_mode<synchronous>, transform_indices = @transform_1, window_bounds = array<i64: 54, 100>}, {transform_indices = @transform_2, window_bounds = array<i64: 32, 100>}]} {
    %c0 = arith.constant 0 : index
    %c0_0 = arith.constant 0 : index
    %0 = vector.load %arg1[%c0, %c0_0] : memref<32x54xf32, #tpu.memory_space<vmem>>, vector<32x54xf32>
    %c0_1 = arith.constant 0 : index
    %c0_2 = arith.constant 0 : index
    %1 = vector.load %arg2[%c0_1, %c0_2] : memref<54x100xf32, #tpu.memory_space<vmem>>, vector<54x100xf32>
    %cst = arith.constant dense<0.000000e+00> : vector<32x100xf32>
    %2 = tpu.matmul %0, %1, %cst {dimension_numbers = #tpu.dot_dimension_numbers<[1], [0], [0], [1], [0, 0, 1, 1], [], []>} : vector<32x54xf32>, vector<54x100xf32>, vector<32x100xf32> -> vector<32x100xf32>
    %c0_3 = arith.constant 0 : index
    %c0_4 = arith.constant 0 : index
    %3 = vector.load %arg3[%c0_3, %c0_4] : memref<32x100xf32, #tpu.memory_space<vmem>>, vector<32x100xf32>
    tpu.vector_store %arg3[%c0_3, %c0_4], %2 {strides = array<i32>} : memref<32x100xf32, #tpu.memory_space<vmem>>, vector<32x100xf32>,
    return
  }
  func.func @transform_0(%arg0: i32) -> (i32, i32) {
    %c0_i32 = arith.constant 0 : i32
    %c0_i32_0 = arith.constant 0 : i32
    return %arg0, %c0_i32 : i32, i32
  }
  func.func @transform_1(%arg0: i32) -> (i32, i32) {
    %c0_i32 = arith.constant 0 : i32
    %c0_i32_0 = arith.constant 0 : i32
    %c0_i32_1 = arith.constant 0 : i32
    return %c0_i32, %c0_i32_0 : i32, i32
  }
  func.func @transform_2(%arg0: i32) -> (i32, i32) {
    %c0_i32 = arith.constant 0 : i32
    %c0_i32_0 = arith.constant 0 : i32
    return %arg0, %c0_i32 : i32, i32
  }
}

</mosaic_0001>

<bundles_post_ra>
// kernel: tpu_custom_call.1
= control target key start
LH: loop header
LB: loop body
LE: loop exit
PB: predicated region body
PF: predicated region fallthrough
CT: control target
= control target key end

     0   :  { %7 = vsyncpa [#allocation3], 0  ;;  %s551_s0 = inlined_call_operand.vmem [shape: f32[64,54], index: 0, kind: input, shape index: {}]   ;;  %s552_s1 = inlined_call_operand.vmem [shape: f32[54,100], index: 1, kind: input, shape index: {}]   ;;  %s553_s2 = inlined_call_operand.hbm [shape: f32[64,100], index: 2, kind: output, shape index: {}]  }
   0x1   :  { %9 = vsyncpa [#allocation3 + $0x1], 0  ;;  %s446_s9 = smov 0   ;;  %s448_s10 = smov 0  }
   0x2   :  { %s450_s11 = smov 0   ;;  %s452_s12 = smov 0  }
   0x3 LB: > { %s467_s13 = sadd.s32 4294967295, %s427_s12   ;;  %s285_s14 = sadd.s32 4294967294, %s427_s12   ;;  %s427_s12 = sphi %s452_s12, %s559_s12   ;;  %s423_s11 = sphi %s450_s11, %s558_s11   ;;  %s419_s10 = sphi %s448_s10, %s557_s10   ;;  %s415_s9 = sphi %s446_s9, %s556_s9  }
   0x4   : > { %s471_s15 = sadd.s32 1, %s427_s12   ;;  %s69_s16 = sadd.s32 1, %s423_s11 }
   0x5   : > { %s66_s17 = ssub.s32 %s427_s12, %s471_s15  ;;  %p79_p0 = scmp.ne.s32.totalorder %s423_s11, %s419_s10 }
   0x6   : > { %p67_p1 = scmp.eq.s32.totalorder %s66_s17, 0  ;;  %p80_p2 = scmp.eq.s32.totalorder %s467_s13, 1 }
   0x7   : > { %p85_p3 = scmp.ne.s32.totalorder %s419_s10, %s415_s9  ;;  %p86_p4 = scmp.eq.s32.totalorder %s285_s14, 1 }
   0x8   : > { %s482_s18 = scalar_select %p67_p1, %s423_s11, %s69_s16  }
   0x9   : > { %p484_p5 = por %p80_p2, %p79_p0  ;;  %p488_p6 = por %p86_p4, %p85_p3 }
   0xa   : > { %p288_p7 = scmp.ge.s32.totalorder %s427_s12, 1  ;;  %p116_p8 = scmp.lt.s32.totalorder %s427_s12, 3 }
   0xc   : > { %p117_p9 = pnand %p288_p7, %p116_p8 }
   0xd   : > { %s290_s25 = sshll.u32 (!%p117_p9), %s467_s13, 2  ;;  %s135_s21 = sand.u32 (!%p117_p9), 1, %s419_s10  }
   0xe   : > { %120 = sbr.rel (%p117_p9) target bundleno = 170 (0xaa), region = 28  ;;  %p139_p10 = scmp.lt.s32.totalorder (!%p117_p9), %s290_s25, 7 }
   0xf   : > { %s289_s22 = sshll.u32 (!%p117_p9), %s135_s21, 5  ;;  %s302_s23 = sshll.u32 (!%p117_p9), %s467_s13, 5 }
  0x10   : > { %s219_s26 = scalar_lea.hbm (!%p117_p9), %s553_s2, %s302_s23  ;;  %s137_s27 = scalar_lea.vmem (!%p117_p9), [#allocation2], %s289_s22 }
  0x11   : > { %s220_s28 = sshll.u32 (!%p117_p9), %s137_s27, 4  ;;  %s222_s29 = sshll.u32 (!%p117_p9), %s219_s26, 4  ;;  %s221_s28 = int_to_ptr.vmem [resolvable:$true] %s220_s28  ;;  %s223_s29 = int_to_ptr.hbm [resolvable:$true] %s222_s29 }
  0x12   : > { %s208_s13 = scalar_lea.sflag (!%p117_p9), [#allocation3], %s135_s21  ;;  %s385_s6 = scalar_lea.hbm (!%p117_p9), %s553_s2, 64 }
  0x13   : > { %v155_v0 = vld [vmem:[%s552_s1 + $0x30] sm:$0x3f]  ;;  %vm169_vm0 = vcmask 1045504   ;;  %v154_v1 = vld [vmem:[%s552_s1 + $0x28] sm:$0xff]  ;;  %v153_v2 = vld [vmem:[%s552_s1 + $0x20] sm:$0xff]  ;;  %s561_s25 = smov (!%p139_p10, %s290_s25), 7 }
  0x14   : > { %304 = vmatpush.msk.msra.mxu2 %vm169_vm0, %v155_v0  ;;  %305 = vmatpush.msk.msra.mxu3 %vm169_vm0, %v155_v0  ;;  %v152_v3 = vld [vmem:[%s552_s1 + $0x18] sm:$0xff]  ;;  %s291_s30 = sshll.u32 %s561_s25, 3  ;;  %v151_v4 = vld [vmem:[%s552_s1 + $0x10] sm:$0xff]  ;;  %v150_v5 = vld [vmem:[%s552_s1 + $0x8] sm:$0xff]  ;;  %vm156_vm1 = vcmask 441344   ;;  %vm202_vm2 = vcmask 818176  }
  0x15   : > { %292 = vmatpush.msk.msra.mxu0 %vm169_vm0, %v155_v0  ;;  %303 = vmatpush.msk.msra.mxu1 %vm169_vm0, %v155_v0  ;;  %s142_s14 = scalar_lea.vmem %s551_s0, %s291_s30  ;;  %v149_v6 = vld [vmem:[%s552_s1] sm:$0xff]  ;;  %s379_s30 = sshra.s32 %s223_s29, 4  ;;  %s380_s30 = int_to_ptr.hbm [resolvable:$true] %s379_s30 }
  0x16   : > { %307 = vmatpush.msra.mxu2 %v154_v1  ;;  %308 = vmatpush.msra.mxu3 %v154_v1  ;;  %v147_v7 = vld [vmem:[%s142_s14 + $0x10] sm:$0xff]  ;;  %v148_v8 = vld [vmem:[%s142_s14 + $0x18] sm:$0xff]  ;;  %v145_v9 = vld [vmem:[%s142_s14] sm:$0xff]  ;;  %s381_s3 = scalar_lea.hbm %s380_s30, 32  ;;  %p386_p0 = scmp.lt.s32.totalorder %s380_s30, %s553_s2 }
  0x17   : > { %183 = vmatpush.msra.mxu0 %v154_v1  ;;  %306 = vmatpush.msra.mxu1 %v154_v1  ;;  %v146_v10 = vld [vmem:[%s142_s14 + $0x8] sm:$0xff]  ;;  %p382_p11 = scmp.ne.s32.totalorder %s380_s30, %s381_s3  ;;  %p387_p1 = scmp.lt.s32.totalorder %s385_s6, %s381_s3 }
  0x18   : > { %310 = vmatpush.msra.mxu2 %v153_v2  ;;  %311 = vmatpush.msra.mxu3 %v153_v2 }
  0x19   : > { %184 = vmatpush.msra.mxu0 %v153_v2  ;;  %309 = vmatpush.msra.mxu1 %v153_v2  ;;  %p383_p12 = pnand %p382_p11, %p484_p5  ;;  %p388_p2 = por %p387_p1, %p386_p0 }
  0x1a   : > { %313 = vmatpush.msra.mxu2 %v152_v3  ;;  %314 = vmatpush.msra.mxu3 %v152_v3 }
  0x1b   : > { %185 = vmatpush.msra.mxu0 %v152_v3  ;;  %312 = vmatpush.msra.mxu1 %v152_v3  ;;  %p384_p13 = pneg %p383_p12 }
  0x1c   : > { %316 = vmatpush.msra.mxu2 %v151_v4  ;;  %317 = vmatpush.msra.mxu3 %v151_v4 }
  0x1d   : > { %186 = vmatpush.msra.mxu0 %v151_v4  ;;  %315 = vmatpush.msra.mxu1 %v151_v4  ;;  %p389_p3 = pnand %p388_p2, %p384_p13 }
  0x1e   : > { %319 = vmatpush.msra.mxu2 %v150_v5  ;;  %320 = vmatpush.msra.mxu3 %v150_v5 }
  0x1f   : > { %187 = vmatpush.msra.mxu0 %v150_v5  ;;  %318 = vmatpush.msra.mxu1 %v150_v5 }
  0x20   : > { %322 = vmatpush.msra.mxu2 %v149_v6  ;;  %323 = vmatpush.msra.mxu3 %v149_v6 }
  0x21   : > { %295 = vmatmul.msk.f32.vlgmr.msra.gmra.mxu2 %vm156_vm1, %v147_v7  ;;  %296 = vmatmul.msk.f32.vlgmr.msra.gmra.mxu3 %vm156_vm1, %v148_v8 }
  0x22   : > { %188 = vmatpush.msra.mxu0 %v149_v6  ;;  %321 = vmatpush.msra.mxu1 %v149_v6 }
  0x23   : > { %293 = vmatmul.msk.f32.vlgmr.msra.gmra.mxu0 %vm156_vm1, %v145_v9  ;;  %294 = vmatmul.msk.f32.vlgmr.msra.gmra.mxu1 %vm156_vm1, %v146_v10 }
  0xa0   : > { %v190_v11 = vpop.f32.mrf.mxu0  ;;  %v193_v12 = vpop.f32.mrf.mxu1 }
  0xa1   : > { %203 = vst.msk [vmem:[%s137_s27] sm:$0xff] %vm202_vm2, %v190_v11 }
  0xa2   : > { %204 = vst.msk [vmem:[%s137_s27 + $0x8] sm:$0xff] %vm202_vm2, %v193_v12 }
  0xa4   : > { %v196_v13 = vpop.f32.mrf.mxu2  ;;  %v199_v14 = vpop.f32.mrf.mxu3 }
  0xa5   : > { %205 = vst.msk [vmem:[%s137_s27 + $0x10] sm:$0xff] %vm202_vm2, %v196_v13 }
  0xa6   : > { %206 = vst.msk [vmem:[%s137_s27 + $0x18] sm:$0xff] %vm202_vm2, %v199_v14 }
  0xa7   : > { %392 = shalt.err (!%p389_p3)
}
  0xa8   : > { %s429_s14 = smov 128   ;;  %s430_s16 = smov 8  }
  0xa9   : > { %324 = dma.vmem_to_hbm [thread:$0]  (%p484_p5), %s221_s28, 512, %s223_s29, %s208_s13, %s429_s14, %s429_s14, %s430_s16  }
  0xaa PF: > { %p330_p4 = scmp.ge.s32.totalorder %s427_s12, 2  ;;  %s237_s17 = sand.u32 1, %s415_s9  }
  0xab   : > { %s238_s21 = scalar_lea.sflag [#allocation3], %s237_s17 }
  0xac   : > { %p327_p7 = pnand %p330_p4, %p488_p6 }
  0xae   : > { %p328_p8 = pneg %p327_p7 }
  0xb0   : > { %410 = dma.done.wait (%p328_p8), %s238_s21, 512  }
  0xb1   : > { %412 = vsyncadd (%p328_p8), %s238_s21, 4294966784  ;;  %p12_p9 = scmp.ge.s32.totalorder %s471_s15, 4   ;;  %s556_s9 = smov %s419_s10 }
  0xb2   : > { %s557_s10 = smov %s423_s11  ;;  %s558_s11 = smov %s482_s18 }
  0xb3   : > { %s559_s12 = smov %s471_s15  ;;  %14 = sbr.rel (!%p12_p9) target bundleno = 3 (0x3), region = 63 }
  0xb8   :  { %244 = vsyncpa [#allocation3], 1 }
  0xb9   :  { %246 = vsyncpa [#allocation3 + $0x1], 1 }

</bundles_post_ra>
